<compile_context>
chip_gen: v5e
topology: v5e:2x2
jax: 0.10.0
libtpu: 0.0.40
codegen_flags: <defaults>
</compile_context>

<pallas_src>
import numpy as np
import jax
import jax.numpy as jnp
from jax.experimental import pallas as pl
from jax.experimental.pallas import tpu as pltpu

VMEM_LIMIT = 48 * 1024 * 1024   # explicit scoped-VMEM budget (fits v5e/v6e/v7x)


# ----------------------------------------------------------------------------
# tiling helpers
# ----------------------------------------------------------------------------

def _pick_row_block(H, W, target_rows=512, max_m=2048):
    """Smallest divisor RB of H with RB*W >= target_rows, capped so RB*W <= max_m."""
    max_rb = max(1, min(H, max_m // max(W, 1)))
    want = max(1, -(-target_rows // W))
    divisors = [d for d in range(1, H + 1) if H % d == 0]
    cands = [d for d in divisors if want <= d <= max_rb]
    if cands:
        return cands[0]
    cands = [d for d in divisors if d <= max_rb]
    return cands[-1] if cands else H


def _pick_out_tile(P, K, bytes_per_elem=2, cap=4096, vmem_budget=4 * 1024 * 1024):
    """Largest divisor of P that is a multiple of 8 (or P itself), <= cap, and whose
    (tile, K) operand block fits the per-buffer VMEM byte budget."""
    best = None
    for d in range(1, P + 1):
        if P % d:
            continue
        if d > cap or d * K * bytes_per_elem > vmem_budget:
            continue
        if d % 8 and d != P:
            continue
        best = d
    if best is None:
        for d in range(1, P + 1):
            if P % d == 0 and d * K * bytes_per_elem <= vmem_budget:
                best = d
    assert best is not None, "no feasible output tile for the resize matmul"
    return best


# ----------------------------------------------------------------------------
# Pallas kernels
# ----------------------------------------------------------------------------

def resize_matmul(m, x, *, out_dtype):
    """Apply a precomposed bilinear-resize operator as one matmul per batch.
    m: (Pout, K) bf16 (kron of H and W resize matrices), x: (N, K, C) bf16."""
    Pout, K = m.shape
    N, _, C = x.shape
    tp = _pick_out_tile(Pout, K)

    def kernel(m_ref, x_ref, o_ref):
        o_ref[0] = jnp.dot(m_ref[...], x_ref[0],
                           preferred_element_type=jnp.float32).astype(o_ref.dtype)

    return pl.pallas_call(
        kernel,
        out_shape=jax.ShapeDtypeStruct((N, Pout, C), out_dtype),
        grid=(N, Pout // tp),
        in_specs=[
            pl.BlockSpec((tp, K), lambda n, p: (p, 0)),
            pl.BlockSpec((1, K, C), lambda n, p: (n, 0, 0)),   # constant in p -> no re-DMA
        ],
        out_specs=pl.BlockSpec((1, tp, C), lambda n, p: (n, p, 0)),
        compiler_params=pltpu.CompilerParams(
            dimension_semantics=("parallel", "parallel"),
            vmem_limit_bytes=VMEM_LIMIT),
    )(m, x)


def conv3x3_bn_relu(xs, ws, bias, *, rb, pres=None, post_w=None, post_b=None,
                    out_dtype=jnp.bfloat16):
    """3x3 conv (stride 1, pad 1) summed over a channel-split input list (split-K), with
    folded-BN bias + ReLU, optional per-input fused 1x1 pre-conv (+BN+ReLU), and optional
    fused trailing 1x1 conv (classifier).

    xs:    list of (N, H, W, Cin_i) bf16 tensors (per-input conv results are summed).
    ws:    list of (3, 3, Ceff_i, Cout) bf16 weights (Ceff_i = pre-conv out channels if any).
    bias:  (1, Cout) f32 folded-BN bias.
    pres:  optional list of (w_pre (Cin_i, Ceff_i) bf16, b_pre (1, Ceff_i) f32) or None.
    post_w / post_b: optional (Cout, Cp) bf16 / (1, Cp) f32 fused 1x1 conv applied after ReLU;
    when present the output is emitted flattened as (N, H*W, Cp).

    Grid is (N, H // rb); the zero halo is assembled in a bf16 VMEM scratch (only the borders
    are zeroed each step) and rb*W pixels form one MXU LHS per (input, dx)."""
    n_in = len(xs)
    if pres is None:
        pres = [None] * n_in
    N, H, W, _ = xs[0].shape
    cin_raw = [x.shape[-1] for x in xs]
    cin_eff = [pres[i][0].shape[1] if pres[i] is not None else cin_raw[i]
               for i in range(n_in)]
    Cout = ws[0].shape[-1]
    fuse_post = post_w is not None
    Cp = post_w.shape[-1] if fuse_post else Cout
    assert H % rb == 0
    nrb = H // rb
    M = rb * W
    if fuse_post:
        assert nrb == 1 or M % 8 == 0, "flattened row block must be sublane aligned"

    def kernel(*args):
        idx = 0
        x_cur, x_top, x_bot = [], [], []
        for _ in range(n_in):
            x_cur.append(args[idx]); x_top.append(args[idx + 1]); x_bot.append(args[idx + 2])
            idx += 3
        w_refs = list(args[idx: idx + n_in]); idx += n_in
        b_ref = args[idx]; idx += 1
        pre_refs = []
        for i in range(n_in):
            if pres[i] is not None:
                pre_refs.append((args[idx], args[idx + 1])); idx += 2
            else:
                pre_refs.append(None)
        if fuse_post:
            pw_ref = args[idx]; pb_ref = args[idx + 1]; idx += 2
        o_ref = args[idx]; idx += 1
        xp_refs = list(args[idx: idx + n_in]); idx += n_in
        acc_ref = args[idx]

        r = pl.program_id(1)
        nblk = pl.num_programs(1)

        # ---- halo assembly: bf16 scratch, only the borders are zeroed ----
        for i in range(n_in):
            xp = xp_refs[i]
            ci = cin_eff[i]

            if pre_refs[i] is not None:
                pwi, pbi = pre_refs[i]

                def pre(v, pwi=pwi, pbi=pbi, ci=ci, craw=cin_raw[i], _dt=xp.dtype):
                    # fused conv1 (1x1) + folded BN + ReLU on the raw low-level rows
                    rows = v.shape[0]
                    u = jnp.dot(v.reshape(rows * W, craw), pwi[...],
                                preferred_element_type=jnp.float32)
                    u = jnp.maximum(u + pbi[...], 0.0)
                    return u.reshape(rows, W, ci).astype(_dt)
            else:
                def pre(v, _dt=xp.dtype):
                    return v.astype(_dt)

            # left / right zero-pad columns (never written elsewhere)
            xp[:, 0:1, :] = jnp.zeros((rb + 2, 1, ci), xp.dtype)
            xp[:, W + 1:W + 2, :] = jnp.zeros((rb + 2, 1, ci), xp.dtype)

            # interior rows = current block
            xp[1:rb + 1, 1:W + 1, :] = pre(x_cur[i][0])

            @pl.when(r > 0)
            def _(xt=x_top[i], xp=xp, pre=pre):
                xp[0:1, 1:W + 1, :] = pre(xt[0])

            @pl.when(r == 0)
            def _(xp=xp, ci=ci):
                xp[0:1, 1:W + 1, :] = jnp.zeros((1, W, ci), xp.dtype)

            @pl.when(r < nblk - 1)
            def _(xb=x_bot[i], xp=xp, pre=pre):
                xp[rb + 1:rb + 2, 1:W + 1, :] = pre(xb[0])

            @pl.when(r == nblk - 1)
            def _(xp=xp, ci=ci):
                xp[rb + 1:rb + 2, 1:W + 1, :] = jnp.zeros((1, W, ci), xp.dtype)

        # ---- taps: one dx-shifted flattened LHS per (input, dx); the 3 dy taps are
        # contiguous row slices of it; one accumulator write/RMW per (input, dx) ----
        first = True
        for i in range(n_in):
            xp = xp_refs[i]
            ci = cin_eff[i]
            w = w_refs[i]
            for dx in range(3):
                lhs = xp[:, dx:dx + W, :].reshape((rb + 2) * W, ci)
                d = jnp.dot(lhs[0:M], w[0, dx], preferred_element_type=jnp.float32)
                d = d + jnp.dot(lhs[W:W + M], w[1, dx], preferred_element_type=jnp.float32)
                d = d + jnp.dot(lhs[2 * W:2 * W + M], w[2, dx],
                                preferred_element_type=jnp.float32)
                if first:
                    acc_ref[...] = d + b_ref[...]        # folded-BN bias in the first write
                    first = False
                else:
                    acc_ref[...] += d

        h = jnp.maximum(acc_ref[...], 0.0)
        if fuse_post:
            out = jnp.dot(h.astype(jnp.bfloat16), pw_ref[...],
                          preferred_element_type=jnp.float32) + pb_ref[...]
            o_ref[0] = out.astype(o_ref.dtype)           # (M, Cp), lane dim = exact Cp
        else:
            o_ref[0] = h.reshape(rb, W, Cout).astype(o_ref.dtype)

    # --- operands and BlockSpecs ---
    operands, in_specs = [], []
    for i in range(n_in):
        craw = cin_raw[i]
        operands += [xs[i], xs[i], xs[i]]   # current rows, top halo row, bottom halo row
        in_specs += [
            pl.BlockSpec((1, rb, W, craw), lambda n, r: (n, r, 0, 0)),
            pl.BlockSpec((1, 1, W, craw),
                         lambda n, r: (n, jnp.maximum(r * rb - 1, 0), 0, 0)),
            pl.BlockSpec((1, 1, W, craw),
                         lambda n, r: (n, jnp.minimum(r * rb + rb, H - 1), 0, 0)),
        ]
    for i in range(n_in):
        operands.append(ws[i])
        in_specs.append(pl.BlockSpec((3, 3, cin_eff[i], Cout), lambda n, r: (0, 0, 0, 0)))
    operands.append(bias)
    in_specs.append(pl.BlockSpec((1, Cout), lambda n, r: (0, 0)))
    for i in range(n_in):
        if pres[i] is not None:
            wp, bp = pres[i]
            operands += [wp, bp]
            in_specs += [pl.BlockSpec(wp.shape, lambda n, r: (0, 0)),
                         pl.BlockSpec(bp.shape, lambda n, r: (0, 0))]
    if fuse_post:
        operands += [post_w, post_b]
        in_specs += [pl.BlockSpec((Cout, Cp), lambda n, r: (0, 0)),
                     pl.BlockSpec((1, Cp), lambda n, r: (0, 0))]

    # TODO(synk): constant-index weight blocks could use pipeline_mode=pl.Buffered(1) to save
    #             VMEM on v7x; omitted here for portability.
    scratch_shapes = [pltpu.VMEM((rb + 2, W + 2, c), jnp.bfloat16) for c in cin_eff]
    scratch_shapes.append(pltpu.VMEM((M, Cout), jnp.float32))

    if fuse_post:
        out_shape = jax.ShapeDtypeStruct((N, H * W, Cp), out_dtype)
        out_spec = pl.BlockSpec((1, M, Cp), lambda n, r: (n, r, 0))
    else:
        out_shape = jax.ShapeDtypeStruct((N, H, W, Cp), out_dtype)
        out_spec = pl.BlockSpec((1, rb, W, Cp), lambda n, r: (n, r, 0, 0))

    return pl.pallas_call(
        kernel,
        out_shape=out_shape,
        grid=(N, nrb),
        in_specs=in_specs,
        out_specs=out_spec,
        scratch_shapes=scratch_shapes,
        compiler_params=pltpu.CompilerParams(
            dimension_semantics=("parallel", "parallel"),
            vmem_limit_bytes=VMEM_LIMIT),
    )(*operands)


# ----------------------------------------------------------------------------
# Bilinear-resize operators (precomputed, PyTorch F.interpolate semantics)
# ----------------------------------------------------------------------------

def _resize_matrix(out_size, in_size, align_corners):
    M = np.zeros((out_size, in_size), np.float32)
    for i in range(out_size):
        if align_corners:
            src = 0.0 if out_size == 1 else i * (in_size - 1) / (out_size - 1)
        else:
            src = (i + 0.5) * in_size / out_size - 0.5
            src = max(src, 0.0)
        p0 = min(int(np.floor(src)), in_size - 1)
        p1 = min(p0 + 1, in_size - 1)
        w1 = src - p0
        M[i, p0] += 1.0 - w1
        M[i, p1] += w1
    return M


def _kron_resize_operator(A, B):
    """Combine per-axis resize matrices A (Hout,Hin), B (Wout,Win) into one
    (Hout*Wout, Hin*Win) operator acting on row-major flattened (H, W) spatial dims."""
    Hout, Hin = A.shape
    Wout, Win = B.shape
    M = np.einsum('ih,jw->ijhw', A.astype(np.float32), B.astype(np.float32))
    return jnp.asarray(M.reshape(Hout * Wout, Hin * Win), dtype=jnp.bfloat16)


# ----------------------------------------------------------------------------
# Parameters (deterministic synthetic init) + BN folding
# ----------------------------------------------------------------------------

def _fold_bn(w, gamma, beta, mean, var, eps=1e-5):
    scale = gamma / jnp.sqrt(var + eps)            # (Cout,)
    w_f = w * scale                                # broadcast over last (Cout) axis
    b_f = (beta - mean * scale).reshape(1, -1)     # (1, Cout)
    return w_f.astype(jnp.float32), b_f.astype(jnp.float32)


def init_params(key, num_classes):
    ks = jax.random.split(key, 10)

    def bn(k, c):
        k1, k2, k3, k4 = jax.random.split(k, 4)
        gamma = jax.random.uniform(k1, (c,), jnp.float32, 0.5, 1.5)
        beta = 0.1 * jax.random.normal(k2, (c,), jnp.float32)
        mean = 0.1 * jax.random.normal(k3, (c,), jnp.float32)
        var = jax.random.uniform(k4, (c,), jnp.float32, 0.5, 1.5)
        return gamma, beta, mean, var

    p = {"num_classes": num_classes}

    # conv1: 1x1, 128 -> 48, no bias, + BN1 (fused into the first 3x3 conv kernel)
    w1 = 0.05 * jax.random.normal(ks[0], (128, 48), jnp.float32)
    w1f, b1f = _fold_bn(w1, *bn(ks[1], 48))
    p["w1"] = w1f.astype(jnp.bfloat16)            # (128, 48)
    p["b1"] = b1f                                  # (1, 48) f32

    # last_conv[0]: 3x3, 304 -> 256, no bias, + BN; K split into aspp(256) + low(48)
    w2 = 0.02 * jax.random.normal(ks[2], (3, 3, 304, 256), jnp.float32)
    w2f, b2f = _fold_bn(w2, *bn(ks[3], 256))
    p["w2a"] = w2f[:, :, :256, :].astype(jnp.bfloat16)
    p["w2b"] = w2f[:, :, 256:, :].astype(jnp.bfloat16)   # (3, 3, 48, 256)
    p["b2"] = b2f

    # last_conv[4]: 3x3, 256 -> 256, no bias, + BN
    w3 = 0.02 * jax.random.normal(ks[4], (3, 3, 256, 256), jnp.float32)
    w3f, b3f = _fold_bn(w3, *bn(ks[5], 256))
    p["w3"] = w3f.astype(jnp.bfloat16)
    p["b3"] = b3f

    # last_conv[8]: 1x1, 256 -> num_classes (with bias) — exact nc channels, no lane padding
    w4 = 0.05 * jax.random.normal(ks[6], (256, num_classes), jnp.float32)
    b4 = 0.1 * jax.random.normal(ks[7], (num_classes,), jnp.float32).reshape(1, -1)
    p["w4"] = w4.astype(jnp.bfloat16)
    p["b4"] = b4
    return p


# ----------------------------------------------------------------------------
# Decoder forward (matches the PyTorch module, eval mode)
# ----------------------------------------------------------------------------

def decoder_forward(params, aspp_nchw, low_nchw):
    nc = params["num_classes"]

    # NCHW -> NHWC glue; bf16 activations feed the MXU.
    aspp = jnp.transpose(aspp_nchw, (0, 2, 3, 1)).astype(jnp.bfloat16)   # (N, Hs, Ws, 256)
    low = jnp.transpose(low_nchw, (0, 2, 3, 1)).astype(jnp.bfloat16)     # (N, H, W, 128)
    N, H, W, Cl = low.shape
    _, Hs, Ws, Ca = aspp.shape

    # upsample ASPP features to (H, W), bilinear, align_corners=True (one fused matmul)
    # TODO(synk): fold this upsample into the first conv's halo assembly at large resolutions.
    m_up = _kron_resize_operator(_resize_matrix(H, Hs, True), _resize_matrix(W, Ws, True))
    aspp_up = resize_matmul(m_up, aspp.reshape(N, Hs * Ws, Ca), out_dtype=jnp.bfloat16)
    aspp_up = aspp_up.reshape(N, H, W, Ca)                                # (N, H, W, 256)

    rb = _pick_row_block(H, W)

    # last_conv[0..3]: 3x3 conv (304 -> 256, concat as split-K) + BN + ReLU (+Dropout=id);
    # conv1 + BN1 + ReLU fused as a per-pixel pre-conv on the raw low-level input.
    x = conv3x3_bn_relu([aspp_up, low], [params["w2a"], params["w2b"]], params["b2"],
                        rb=rb, pres=[None, (params["w1"], params["b1"])],
                        out_dtype=jnp.bfloat16)                           # (N, H, W, 256)

    # last_conv[4..8]: 3x3 conv (256 -> 256) + BN + ReLU (+Dropout=id), fused with the final
    # 1x1 classifier (256 -> num_classes, exact channels) -> (N, H*W, nc) bf16
    logits = conv3x3_bn_relu([x], [params["w3"]], params["b3"], rb=rb,
                             post_w=params["w4"], post_b=params["b4"],
                             out_dtype=jnp.bfloat16)

    # final resizes composed into one operator:
    #   (H,W) -> (H+1,W+1), bilinear, align_corners=False, then x4, bilinear, align_corners=True
    Hout, Wout = 4 * (H + 1), 4 * (W + 1)
    A = _resize_matrix(Hout, H + 1, True) @ _resize_matrix(H + 1, H, False)
    B = _resize_matrix(Wout, W + 1, True) @ _resize_matrix(W + 1, W, False)
    m_fin = _kron_resize_operator(A, B)
    y = resize_matmul(m_fin, logits, out_dtype=jnp.float32)               # (N, Hout*Wout, nc)
    y = y.reshape(N, Hout, Wout, nc)

    # NHWC -> NCHW glue to match the PyTorch output convention (only nc channels carried)
    return jnp.transpose(y, (0, 3, 1, 2))


# ----------------------------------------------------------------------------

if __name__ == "__main__":
    key = jax.random.PRNGKey(0)
    k_aspp, k_low, k_par = jax.random.split(key, 3)

    num_classes = 4
    # Small shapes consistent with the module: aspp has 256 ch (304 - 48), low-level has 128 ch.
    aspp_features = jax.random.normal(k_aspp, (2, 256, 8, 8), jnp.float32)        # NCHW
    low_level_features = jax.random.normal(k_low, (2, 128, 16, 16), jnp.float32)  # NCHW

    params = init_params(k_par, num_classes)

    out = decoder_forward(params, aspp_features, low_level_features)
    out = jax.block_until_ready(out)

    assert out.shape == (2, num_classes, 68, 68), out.shape
    assert bool(jnp.all(jnp.isfinite(out)))
    print("KERNEL_OK")
</pallas_src>

<mosaic_0001>
module attributes {stable_mosaic.version = 11 : i64} {
  func.func @kernel(%arg0: i32, %arg1: i32, %arg2: memref<256x64xbf16, #tpu.memory_space<vmem>>, %arg3: memref<1x64x256xbf16, #tpu.memory_space<vmem>>, %arg4: memref<1x256x256xbf16, #tpu.memory_space<vmem>>) attributes {dimension_semantics = [#tpu.dimension_semantics<parallel>, #tpu.dimension_semantics<parallel>], iteration_bounds = array<i64: 2, 1>, scalar_prefetch = 0 : i64, scratch_operands = 0 : i64, tpu.core_type = #tpu.core_type<tc>, window_params = [{transform_indices = @transform_0, window_bounds = array<i64: 256, 64>}, {transform_indices = @transform_1, window_bounds = array<i64: 1, 64, 256>}, {transform_indices = @transform_2, window_bounds = array<i64: 1, 256, 256>}]} {
    %c0 = arith.constant 0 : index
    %c0_0 = arith.constant 0 : index
    %0 = vector.load %arg2[%c0, %c0_0] : memref<256x64xbf16, #tpu.memory_space<vmem>>, vector<256x64xbf16>
    %c0_1 = arith.constant 0 : index
    %c0_2 = arith.constant 0 : index
    %c0_3 = arith.constant 0 : index
    %1 = vector.load %arg3[%c0_1, %c0_2, %c0_3] : memref<1x64x256xbf16, #tpu.memory_space<vmem>>, vector<1x64x256xbf16>
    %2 = vector.shape_cast %1 : vector<1x64x256xbf16> to vector<64x256xbf16>
    %cst = arith.constant dense<0.000000e+00> : vector<256x256xf32>
    %3 = tpu.matmul %0, %2, %cst {dimension_numbers = #tpu.dot_dimension_numbers<[1], [0], [0], [1], [0, 0, 1, 1], [], []>} : vector<256x64xbf16>, vector<64x256xbf16>, vector<256x256xf32> -> vector<256x256xf32>
    %4 = arith.truncf %3 : vector<256x256xf32> to vector<256x256xbf16>
    %c0_4 = arith.constant 0 : index
    %c0_5 = arith.constant 0 : index
    %c0_6 = arith.constant 0 : index
    %5 = vector.load %arg4[%c0_4, %c0_5, %c0_6] : memref<1x256x256xbf16, #tpu.memory_space<vmem>>, vector<1x256x256xbf16>
    %6 = vector.shape_cast %5 : vector<1x256x256xbf16> to vector<256x256xbf16>
    %7 = vector.shape_cast %4 : vector<256x256xbf16> to vector<1x256x256xbf16>
    tpu.vector_store %arg4[%c0_4, %c0_5, %c0_6], %7 {strides = array<i32>} : memref<1x256x256xbf16, #tpu.memory_space<vmem>>, vector<1x256x256xbf16>,
    return
  }
  func.func @transform_0(%arg0: i32, %arg1: i32) -> (i32, i32) {
    %c0_i32 = arith.constant 0 : i32
    %c0_i32_0 = arith.constant 0 : i32
    return %arg1, %c0_i32 : i32, i32
  }
  func.func @transform_1(%arg0: i32, %arg1: i32) -> (i32, i32, i32) {
    %c0_i32 = arith.constant 0 : i32
    %c0_i32_0 = arith.constant 0 : i32
    %c0_i32_1 = arith.constant 0 : i32
    return %arg0, %c0_i32, %c0_i32_0 : i32, i32, i32
  }
  func.func @transform_2(%arg0: i32, %arg1: i32) -> (i32, i32, i32) {
    %c0_i32 = arith.constant 0 : i32
    %c0_i32_0 = arith.constant 0 : i32
    return %arg0, %arg1, %c0_i32 : i32, i32, i32
  }
}

</mosaic_0001>

<bundles_post_ra>
// kernel: tpu_custom_call.1
= control target key start
LH: loop header
LB: loop body
LE: loop exit
PB: predicated region body
PF: predicated region fallthrough
CT: control target
= control target key end

     0   :  { %7 = vsyncpa [#allocation3], 0  ;;  %s1284_s0 = inlined_call_operand.vmem [shape: bf16[256,64], index: 0, kind: input, shape index: {}]   ;;  %s1285_s1 = inlined_call_operand.vmem [shape: bf16[2,64,256], index: 1, kind: input, shape index: {}]   ;;  %s1286_s2 = inlined_call_operand.hbm [shape: bf16[2,256,256], index: 2, kind: output, shape index: {}]  }
   0x1   :  { %9 = vsyncpa [#allocation3 + $0x1], 0  ;;  %s1068_s9 = smov 0   ;;  %s1070_s10 = smov 0  }
   0x2   :  { %s1072_s11 = smov 0   ;;  %s1074_s12 = smov 0  }
   0x3   :  { %s1076_s13 = smov 0   ;;  %s1078_s14 = smov 0  }
   0x4 LB: > { %s738_s15 = sadd.s32 4294967295, %s1049_s14   ;;  %s739_s16 = sadd.s32 4294967294, %s1049_s14   ;;  %s1049_s14 = sphi %s1078_s14, %s15_s14   ;;  %s1045_s13 = sphi %s1076_s13, %s1293_s13   ;;  %s1041_s12 = sphi %s1074_s12, %s1292_s12   ;;  %s1037_s11 = sphi %s1072_s11, %s1291_s11   ;;  %s1033_s10 = sphi %s1070_s10, %s1290_s10   ;;  %s1029_s9 = sphi %s1068_s9, %s1289_s9  }
   0x5   : > { %s27_s17 = sadd.s32 1, %s1045_s13  ;;  %s88_s18 = sadd.s32 1, %s1037_s11 }
   0x6   : > { %p29_p0 = scmp.ge.s32.totalorder %s27_s17, 2  ;;  %p98_p1 = scmp.ne.s32.totalorder %s1037_s11, %s1033_s10 }
   0x7   : > { %p99_p2 = scmp.eq.s32.totalorder %s738_s15, 1  ;;  %p104_p3 = scmp.ne.s32.totalorder %s1033_s10, %s1029_s9 }
   0x8   : > { %s1295_s17 = smov (%p29_p0, %s27_s17), 0  ;;  %p105_p5 = scmp.eq.s32.totalorder %s739_s16, 1 }
   0x9   : > { %p1108_p4 = por %p99_p2, %p98_p1  ;;  %s83_s20 = ssub.s32 %s1045_s13, %s1295_s17 }
   0xa   : > { %p743_p6 = scmp.ge.s32.totalorder %s1049_s14, 1  ;;  %p86_p7 = scmp.eq.s32.totalorder %s83_s20, 0 }
   0xb   : > { %p1115_p8 = por %p105_p5, %p104_p3  ;;  %p140_p9 = scmp.lt.s32.totalorder %s1049_s14, 3 }
   0xc   : > { %s1121_s22 = scalar_select %p86_p7, %s1037_s11, %s88_s18  }
   0xd   : > { %p141_p10 = pnand %p743_p6, %p140_p9 }
   0xe   : > { %p173_p11 = scmp.lt.s32.totalorder (!%p141_p10), %s1041_s12, 1  ;;  %s991_s15 = scalar_lea.hbm (!%p141_p10), %s1286_s2, 512 }
   0xf   : > { %144 = sbr.rel (%p141_p10) target bundleno = 301 (0x12d), region = 28 }
  0x14   : > { %s174_s23 = scalar_select %p173_p11, %s1041_s12, 1  ;;  %v881_v24 = vld [vmem:[%s1284_s0] sm:$0xff]  ;;  %vm340_vm0 = vcmask 523264   ;;  %v882_v26 = vld [vmem:[%s1284_s0 + $0x8] sm:$0xff]  ;;  %v883_v28 = vld [vmem:[%s1284_s0 + $0x10] sm:$0xff] }
  0x15   : > { %v889_v25 = vld [vmem:[%s1284_s0 + $0x40] sm:$0xff]  ;;  %v890_v27 = vld [vmem:[%s1284_s0 + $0x48] sm:$0xff]  ;;  %v891_v29 = vld [vmem:[%s1284_s0 + $0x50] sm:$0xff] }
  0x16   : > { %s880_s24 = sshll.u32 %s174_s23, 6  ;;  %v884_v30 = vld [vmem:[%s1284_s0 + $0x18] sm:$0xff]  ;;  %v885_v32 = vld [vmem:[%s1284_s0 + $0x20] sm:$0xff]  ;;  %v886_v34 = vld [vmem:[%s1284_s0 + $0x28] sm:$0xff] }
  0x17   : > { %s177_s27 = scalar_lea.vmem %s1285_s1, %s880_s24  ;;  %v892_v31 = vld [vmem:[%s1284_s0 + $0x58] sm:$0xff]  ;;  %v893_v33 = vld [vmem:[%s1284_s0 + $0x60] sm:$0xff]  ;;  %v894_v35 = vld [vmem:[%s1284_s0 + $0x68] sm:$0xff]  ;;  %s164_s24 = sand.u32 1, %s1033_s10  }
  0x18   : > { %v837_v0 = vld [vmem:[%s177_s27 + $0x30] sm:$0xf]  ;;  %v904_v1 = vld [vmem:[%s177_s27 + $0x34] sm:$0xf0]  ;;  %v903_v2 = vld [vmem:[%s177_s27 + $0x34] sm:$0xf] }
  0x19   : > { %v838_v3 = vor.u32 %v904_v1, %v837_v0  ;;  %v839_v4 = vld [vmem:[%s177_s27 + $0x38] sm:$0xf0]  ;;  %v829_v5 = vld [vmem:[%s177_s27 + $0x20] sm:$0xf]  ;;  %v902_v6 = vld [vmem:[%s177_s27 + $0x24] sm:$0xf0] }
  0x1a   : > { %v842_v7 = vor.u32 %v903_v2, %v839_v4  ;;  %v901_v8 = vld [vmem:[%s177_s27 + $0x24] sm:$0xf]  ;;  %v831_v9 = vld [vmem:[%s177_s27 + $0x28] sm:$0xf0]  ;;  %v830_v10 = vor.u32 %v902_v6, %v829_v5  ;;  %v821_v12 = vld [vmem:[%s177_s27 + $0x10] sm:$0xf] }
  0x1b   : > { %393 = vmatpush.bf16.msra.mxu0 %v838_v3  ;;  %906 = vmatpush.bf16.msra.mxu2 %v838_v3  ;;  %v834_v11 = vor.u32 %v901_v8, %v831_v9  ;;  %v900_v13 = vld [vmem:[%s177_s27 + $0x14] sm:$0xf0]  ;;  %v899_v14 = vld [vmem:[%s177_s27 + $0x14] sm:$0xf]  ;;  %v823_v15 = vld [vmem:[%s177_s27 + $0x18] sm:$0xf0] }
  0x1c   : > { %482 = vmatpush.bf16.msra.mxu1 %v842_v7  ;;  %910 = vmatpush.bf16.msra.mxu3 %v842_v7  ;;  %v822_v16 = vor.u32 %v900_v13, %v821_v12  ;;  %v826_v17 = vor.u32 %v899_v14, %v823_v15  ;;  %v813_v18 = vld [vmem:[%s177_s27] sm:$0xf]  ;;  %v898_v19 = vld [vmem:[%s177_s27 + $0x4] sm:$0xf0]  ;;  %v897_v20 = vld [vmem:[%s177_s27 + $0x4] sm:$0xf] }
  0x1d   : > { %v815_v21 = vld [vmem:[%s177_s27 + $0x8] sm:$0xf0]  ;;  %v814_v22 = vor.u32 %v898_v19, %v813_v18  ;;  %v887_v36 = vld [vmem:[%s1284_s0 + $0x30] sm:$0xff]  ;;  %v888_v38 = vld [vmem:[%s1284_s0 + $0x38] sm:$0xff]  ;;  %s744_s25 = sshll.u32 %s164_s24, 8  ;;  %s905_s27 = sshll.u32 %s1041_s12, 8 }
  0x1e   : > { %v818_v23 = vor.u32 %v897_v20, %v815_v21  ;;  %v895_v37 = vld [vmem:[%s1284_s0 + $0x70] sm:$0xff]  ;;  %v896_v39 = vld [vmem:[%s1284_s0 + $0x78] sm:$0xff]  ;;  %s1211_s26 = scalar_lea.vmem [#allocation2], %s744_s25  ;;  %s646_s30 = scalar_lea.hbm %s1286_s2, %s905_s27 }
  0x1f   : > { %394 = vmatpush.bf16.msra.mxu0 %v830_v10  ;;  %907 = vmatpush.bf16.msra.mxu2 %v830_v10  ;;  %s647_s3 = sshll.u32 %s1211_s26, 4  ;;  %s649_s4 = sshll.u32 %s646_s30, 4  ;;  %s648_s3 = int_to_ptr.vmem [resolvable:$true] %s647_s3  ;;  %s650_s4 = int_to_ptr.hbm [resolvable:$true] %s649_s4 }
  0x20   : > { %483 = vmatpush.bf16.msra.mxu1 %v834_v11  ;;  %911 = vmatpush.bf16.msra.mxu3 %v834_v11  ;;  %s632_s12 = scalar_lea.sflag [#allocation3], %s164_s24  ;;  %s985_s5 = sshra.s32 %s650_s4, 4  ;;  %s986_s5 = int_to_ptr.hbm [resolvable:$true] %s985_s5 }
  0x21   : > { %s987_s6 = scalar_lea.hbm %s986_s5, 256  ;;  %p992_p1 = scmp.lt.s32.totalorder %s986_s5, %s1286_s2 }
  0x22   : > { %p988_p12 = scmp.ne.s32.totalorder %s986_s5, %s987_s6  ;;  %p993_p2 = scmp.lt.s32.totalorder %s991_s15, %s987_s6 }
  0x23   : > { %395 = vmatpush.bf16.msra.mxu0 %v822_v16  ;;  %908 = vmatpush.bf16.msra.mxu2 %v822_v16 }
  0x24   : > { %484 = vmatpush.bf16.msra.mxu1 %v826_v17  ;;  %912 = vmatpush.bf16.msra.mxu3 %v826_v17  ;;  %p989_p13 = pnand %p988_p12, %p1108_p4  ;;  %p994_p3 = por %p993_p2, %p992_p1 }
  0x26   : > { %p990_p0 = pneg %p989_p13 }
  0x27   : > { %396 = vmatpush.bf16.msra.mxu0 %v814_v22  ;;  %909 = vmatpush.bf16.msra.mxu2 %v814_v22 }
  0x28   : > { %485 = vmatpush.bf16.msra.mxu1 %v818_v23  ;;  %913 = vmatpush.bf16.msra.mxu3 %v818_v23  ;;  %p995_p5 = pnand %p994_p3, %p990_p0 }
  0x2a   : > { %843 = vmatmul.msk.bf16.vlgmr.msra.gmra.mxu0 %vm340_vm0, %v881_v24  ;;  %851 = vmatmul.msk.bf16.vlgmr.msra.gmra.mxu2 %vm340_vm0, %v889_v25 }
  0x2b   : > { %859 = vmatmul.msk.bf16.vlgmr.msra.gmra.mxu1 %vm340_vm0, %v881_v24  ;;  %867 = vmatmul.msk.bf16.vlgmr.msra.gmra.mxu3 %vm340_vm0, %v889_v25 }
  0x3a   : > { %844 = vmatmul.msk.bf16.gmra.mxu0 %vm340_vm0, %v882_v26  ;;  %852 = vmatmul.msk.bf16.gmra.mxu2 %vm340_vm0, %v890_v27 }
  0x3b   : > { %860 = vmatmul.msk.bf16.gmra.mxu1 %vm340_vm0, %v882_v26  ;;  %868 = vmatmul.msk.bf16.gmra.mxu3 %vm340_vm0, %v890_v27 }
  0x4a   : > { %845 = vmatmul.msk.bf16.gmra.mxu0 %vm340_vm0, %v883_v28  ;;  %853 = vmatmul.msk.bf16.gmra.mxu2 %vm340_vm0, %v891_v29 }
  0x4b   : > { %861 = vmatmul.msk.bf16.gmra.mxu1 %vm340_vm0, %v883_v28  ;;  %869 = vmatmul.msk.bf16.gmra.mxu3 %vm340_vm0, %v891_v29 }
  0x5a   : > { %846 = vmatmul.msk.bf16.gmra.mxu0 %vm340_vm0, %v884_v30  ;;  %854 = vmatmul.msk.bf16.gmra.mxu2 %vm340_vm0, %v892_v31 }
  0x5b   : > { %862 = vmatmul.msk.bf16.gmra.mxu1 %vm340_vm0, %v884_v30  ;;  %870 = vmatmul.msk.bf16.gmra.mxu3 %vm340_vm0, %v892_v31 }
  0x6a   : > { %847 = vmatmul.msk.bf16.gmra.mxu0 %vm340_vm0, %v885_v32  ;;  %855 = vmatmul.msk.bf16.gmra.mxu2 %vm340_vm0, %v893_v33 }
  0x6b   : > { %863 = vmatmul.msk.bf16.gmra.mxu1 %vm340_vm0, %v885_v32  ;;  %871 = vmatmul.msk.bf16.gmra.mxu3 %vm340_vm0, %v893_v33 }
  0x7a   : > { %848 = vmatmul.msk.bf16.gmra.mxu0 %vm340_vm0, %v886_v34  ;;  %856 = vmatmul.msk.bf16.gmra.mxu2 %vm340_vm0, %v894_v35 }
  0x7b   : > { %864 = vmatmul.msk.bf16.gmra.mxu1 %vm340_vm0, %v886_v34  ;;  %872 = vmatmul.msk.bf16.gmra.mxu3 %vm340_vm0, %v894_v35 }
  0x8a   : > { %849 = vmatmul.msk.bf16.gmra.mxu0 %vm340_vm0, %v887_v36  ;;  %857 = vmatmul.msk.bf16.gmra.mxu2 %vm340_vm0, %v895_v37 }
  0x8b   : > { %865 = vmatmul.msk.bf16.gmra.mxu1 %vm340_vm0, %v887_v36  ;;  %873 = vmatmul.msk.bf16.gmra.mxu3 %vm340_vm0, %v895_v37 }
  0x9a   : > { %850 = vmatmul.msk.bf16.gmra.mxu0 %vm340_vm0, %v888_v38  ;;  %858 = vmatmul.msk.bf16.gmra.mxu2 %vm340_vm0, %v896_v39 }
  0x9b   : > { %866 = vmatmul.msk.bf16.gmra.mxu1 %vm340_vm0, %v888_v38  ;;  %874 = vmatmul.msk.bf16.gmra.mxu3 %vm340_vm0, %v896_v39 }
  0xa7   : > { %v398_v40 = vpop.f32.mrf.mxu0 }
  0xa8   : > { %v487_v41 = vpop.f32.mrf.mxu1 }
  0xa9   : > { %v567_v42 = vpack.c.bf16 %v487_v41, %v398_v40 }
  0xab   : > { %599 = vst [vmem:[%s1211_s26] sm:$0xff] %v567_v42 }
  0xad   : > { %v438_v43 = vpop.f32.mrf.mxu2 }
  0xae   : > { %v527_v44 = vpop.f32.mrf.mxu3 }
  0xaf   : > { %v583_v45 = vpack.c.bf16 %v527_v44, %v438_v43  ;;  %v400_v46 = vpop.f32.mrf.mxu0 }
  0xb0   : > { %v489_v47 = vpop.f32.mrf.mxu1 }
  0xb1   : > { %615 = vst [vmem:[%s1211_s26 + $0x80] sm:$0xff] %v583_v45  ;;  %v568_v48 = vpack.c.bf16 %v489_v47, %v400_v46 }
  0xb3   : > { %600 = vst [vmem:[%s1211_s26 + $0x8] sm:$0xff] %v568_v48 }
  0xb5   : > { %v440_v49 = vpop.f32.mrf.mxu2 }
  0xb6   : > { %v529_v50 = vpop.f32.mrf.mxu3 }
  0xb7   : > { %v584_v51 = vpack.c.bf16 %v529_v50, %v440_v49  ;;  %v403_v52 = vpop.f32.mrf.mxu0 }
  0xb8   : > { %v492_v53 = vpop.f32.mrf.mxu1 }
  0xb9   : > { %616 = vst [vmem:[%s1211_s26 + $0x88] sm:$0xff] %v584_v51  ;;  %v569_v54 = vpack.c.bf16 %v492_v53, %v403_v52 }
  0xbb   : > { %601 = vst [vmem:[%s1211_s26 + $0x10] sm:$0xff] %v569_v54 }
  0xbd   : > { %v443_v55 = vpop.f32.mrf.mxu2 }
  0xbe   : > { %v532_v56 = vpop.f32.mrf.mxu3 }
  0xbf   : > { %v585_v57 = vpack.c.bf16 %v532_v56, %v443_v55  ;;  %v405_v58 = vpop.f32.mrf.mxu0 }
  0xc0   : > { %v494_v59 = vpop.f32.mrf.mxu1 }
  0xc1   : > { %617 = vst [vmem:[%s1211_s26 + $0x90] sm:$0xff] %v585_v57  ;;  %v570_v60 = vpack.c.bf16 %v494_v59, %v405_v58 }
  0xc3   : > { %602 = vst [vmem:[%s1211_s26 + $0x18] sm:$0xff] %v570_v60 }
  0xc5   : > { %v445_v61 = vpop.f32.mrf.mxu2 }
  0xc6   : > { %v534_v62 = vpop.f32.mrf.mxu3 }
  0xc7   : > { %v586_v63 = vpack.c.bf16 %v534_v62, %v445_v61  ;;  %v408_v0 = vpop.f32.mrf.mxu0 }
  0xc8   : > { %v497_v1 = vpop.f32.mrf.mxu1 }
  0xc9   : > { %618 = vst [vmem:[%s1211_s26 + $0x98] sm:$0xff] %v586_v63  ;;  %v571_v2 = vpack.c.bf16 %v497_v1, %v408_v0 }
  0xcb   : > { %603 = vst [vmem:[%s1211_s26 + $0x20] sm:$0xff] %v571_v2 }
  0xcd   : > { %v448_v3 = vpop.f32.mrf.mxu2 }
  0xce   : > { %v537_v4 = vpop.f32.mrf.mxu3 }
  0xcf   : > { %v587_v5 = vpack.c.bf16 %v537_v4, %v448_v3  ;;  %v410_v6 = vpop.f32.mrf.mxu0 }
  0xd0   : > { %v499_v7 = vpop.f32.mrf.mxu1 }
  0xd1   : > { %619 = vst [vmem:[%s1211_s26 + $0xa0] sm:$0xff] %v587_v5  ;;  %v572_v8 = vpack.c.bf16 %v499_v7, %v410_v6 }
  0xd3   : > { %604 = vst [vmem:[%s1211_s26 + $0x28] sm:$0xff] %v572_v8 }
  0xd5   : > { %v450_v9 = vpop.f32.mrf.mxu2 }
  0xd6   : > { %v539_v10 = vpop.f32.mrf.mxu3 }
  0xd7   : > { %v588_v11 = vpack.c.bf16 %v539_v10, %v450_v9  ;;  %v413_v12 = vpop.f32.mrf.mxu0 }
  0xd8   : > { %v502_v13 = vpop.f32.mrf.mxu1 }
  0xd9   : > { %620 = vst [vmem:[%s1211_s26 + $0xa8] sm:$0xff] %v588_v11  ;;  %v573_v14 = vpack.c.bf16 %v502_v13, %v413_v12 }
  0xdb   : > { %605 = vst [vmem:[%s1211_s26 + $0x30] sm:$0xff] %v573_v14 }
  0xdd   : > { %v453_v15 = vpop.f32.mrf.mxu2 }
  0xde   : > { %v542_v16 = vpop.f32.mrf.mxu3 }
  0xdf   : > { %v589_v17 = vpack.c.bf16 %v542_v16, %v453_v15  ;;  %v415_v18 = vpop.f32.mrf.mxu0 }
  0xe0   : > { %v504_v19 = vpop.f32.mrf.mxu1 }
  0xe1   : > { %621 = vst [vmem:[%s1211_s26 + $0xb0] sm:$0xff] %v589_v17  ;;  %v574_v20 = vpack.c.bf16 %v504_v19, %v415_v18 }
  0xe3   : > { %606 = vst [vmem:[%s1211_s26 + $0x38] sm:$0xff] %v574_v20 }
  0xe5   : > { %v455_v21 = vpop.f32.mrf.mxu2 }
  0xe6   : > { %v544_v22 = vpop.f32.mrf.mxu3 }
  0xe7   : > { %v590_v23 = vpack.c.bf16 %v544_v22, %v455_v21  ;;  %v418_v24 = vpop.f32.mrf.mxu0 }
  0xe8   : > { %v507_v25 = vpop.f32.mrf.mxu1 }
  0xe9   : > { %622 = vst [vmem:[%s1211_s26 + $0xb8] sm:$0xff] %v590_v23  ;;  %v575_v26 = vpack.c.bf16 %v507_v25, %v418_v24 }
  0xeb   : > { %607 = vst [vmem:[%s1211_s26 + $0x40] sm:$0xff] %v575_v26 }
  0xed   : > { %v458_v27 = vpop.f32.mrf.mxu2 }
  0xee   : > { %v547_v28 = vpop.f32.mrf.mxu3 }
  0xef   : > { %v591_v29 = vpack.c.bf16 %v547_v28, %v458_v27  ;;  %v420_v30 = vpop.f32.mrf.mxu0 }
  0xf0   : > { %v509_v31 = vpop.f32.mrf.mxu1 }
  0xf1   : > { %623 = vst [vmem:[%s1211_s26 + $0xc0] sm:$0xff] %v591_v29  ;;  %v576_v32 = vpack.c.bf16 %v509_v31, %v420_v30 }
  0xf3   : > { %608 = vst [vmem:[%s1211_s26 + $0x48] sm:$0xff] %v576_v32 }
  0xf5   : > { %v460_v33 = vpop.f32.mrf.mxu2 }
  0xf6   : > { %v549_v34 = vpop.f32.mrf.mxu3 }
  0xf7   : > { %v592_v35 = vpack.c.bf16 %v549_v34, %v460_v33  ;;  %v423_v36 = vpop.f32.mrf.mxu0 }
  0xf8   : > { %v512_v37 = vpop.f32.mrf.mxu1 }
  0xf9   : > { %624 = vst [vmem:[%s1211_s26 + $0xc8] sm:$0xff] %v592_v35  ;;  %v577_v38 = vpack.c.bf16 %v512_v37, %v423_v36 }
  0xfb   : > { %609 = vst [vmem:[%s1211_s26 + $0x50] sm:$0xff] %v577_v38 }
  0xfd   : > { %v463_v39 = vpop.f32.mrf.mxu2 }
  0xfe   : > { %v552_v40 = vpop.f32.mrf.mxu3 }
  0xff   : > { %v593_v41 = vpack.c.bf16 %v552_v40, %v463_v39  ;;  %v425_v42 = vpop.f32.mrf.mxu0 }
 0x100   : > { %v514_v43 = vpop.f32.mrf.mxu1 }
 0x101   : > { %625 = vst [vmem:[%s1211_s26 + $0xd0] sm:$0xff] %v593_v41  ;;  %v578_v44 = vpack.c.bf16 %v514_v43, %v425_v42 }
 0x103   : > { %610 = vst [vmem:[%s1211_s26 + $0x58] sm:$0xff] %v578_v44 }
 0x105   : > { %v465_v45 = vpop.f32.mrf.mxu2 }
 0x106   : > { %v554_v46 = vpop.f32.mrf.mxu3 }
 0x107   : > { %v594_v47 = vpack.c.bf16 %v554_v46, %v465_v45  ;;  %v428_v48 = vpop.f32.mrf.mxu0 }
 0x108   : > { %v517_v49 = vpop.f32.mrf.mxu1 }
 0x109   : > { %626 = vst [vmem:[%s1211_s26 + $0xd8] sm:$0xff] %v594_v47  ;;  %v579_v50 = vpack.c.bf16 %v517_v49, %v428_v48 }
 0x10b   : > { %611 = vst [vmem:[%s1211_s26 + $0x60] sm:$0xff] %v579_v50 }
 0x10d   : > { %v468_v51 = vpop.f32.mrf.mxu2 }
 0x10e   : > { %v557_v52 = vpop.f32.mrf.mxu3 }
 0x10f   : > { %v595_v53 = vpack.c.bf16 %v557_v52, %v468_v51  ;;  %v430_v54 = vpop.f32.mrf.mxu0 }
 0x110   : > { %v519_v55 = vpop.f32.mrf.mxu1 }
 0x111   : > { %627 = vst [vmem:[%s1211_s26 + $0xe0] sm:$0xff] %v595_v53  ;;  %v580_v56 = vpack.c.bf16 %v519_v55, %v430_v54 }
 0x113   : > { %612 = vst [vmem:[%s1211_s26 + $0x68] sm:$0xff] %v580_v56 }
 0x115   : > { %v470_v57 = vpop.f32.mrf.mxu2 }
 0x116   : > { %v559_v58 = vpop.f32.mrf.mxu3 }
 0x117   : > { %v596_v59 = vpack.c.bf16 %v559_v58, %v470_v57  ;;  %v433_v60 = vpop.f32.mrf.mxu0 }
 0x118   : > { %v522_v61 = vpop.f32.mrf.mxu1 }
 0x119   : > { %628 = vst [vmem:[%s1211_s26 + $0xe8] sm:$0xff] %v596_v59  ;;  %v581_v62 = vpack.c.bf16 %v522_v61, %v433_v60 }
 0x11b   : > { %613 = vst [vmem:[%s1211_s26 + $0x70] sm:$0xff] %v581_v62 }
 0x11d   : > { %v473_v63 = vpop.f32.mrf.mxu2 }
 0x11e   : > { %v562_v0 = vpop.f32.mrf.mxu3 }
 0x11f   : > { %v597_v1 = vpack.c.bf16 %v562_v0, %v473_v63  ;;  %v435_v2 = vpop.f32.mrf.mxu0 }
 0x120   : > { %v524_v3 = vpop.f32.mrf.mxu1 }
 0x121   : > { %629 = vst [vmem:[%s1211_s26 + $0xf0] sm:$0xff] %v597_v1  ;;  %v582_v4 = vpack.c.bf16 %v524_v3, %v435_v2 }
 0x123   : > { %614 = vst [vmem:[%s1211_s26 + $0x78] sm:$0xff] %v582_v4 }
 0x125   : > { %v475_v5 = vpop.f32.mrf.mxu2 }
 0x126   : > { %v564_v6 = vpop.f32.mrf.mxu3 }
 0x127   : > { %v598_v7 = vpack.c.bf16 %v564_v6, %v475_v5 }
 0x129   : > { %630 = vst [vmem:[%s1211_s26 + $0xf8] sm:$0xff] %v598_v7 }
 0x12a   : > { %998 = shalt.err (!%p995_p5)
}
 0x12b   : > { %s1051_s20 = smov 128   ;;  %s1052_s23 = smov 8  }
 0x12c   : > { %914 = dma.vmem_to_hbm [thread:$0]  (%p1108_p4), %s648_s3, 4096, %s650_s4, %s632_s12, %s1051_s20, %s1051_s20, %s1052_s23  }
 0x12d PF: > { %p920_p6 = scmp.ge.s32.totalorder %s1049_s14, 2  ;;  %s664_s24 = sand.u32 1, %s1029_s9  }
 0x12e   : > { %s665_s25 = scalar_lea.sflag [#allocation3], %s664_s24 }
 0x12f   : > { %p917_p7 = pnand %p920_p6, %p1115_p8 }
 0x131   : > { %p918_p9 = pneg %p917_p7 }
 0x133   : > { %1024 = dma.done.wait (%p918_p9), %s665_s25, 4096  }
 0x134   : > { %1026 = vsyncadd (%p918_p9), %s665_s25, 4294963200  ;;  %s15_s14 = sadd.s32 1, %s1049_s14   ;;  %s1289_s9 = smov %s1033_s10 }
 0x135   : > { %p12_p10 = scmp.ge.s32.totalorder %s15_s14, 4   ;;  %s1290_s10 = smov %s1037_s11 }
 0x136   : > { %s1291_s11 = smov %s1121_s22  ;;  %s1292_s12 = smov %s1045_s13 }
 0x137   : > { %s1293_s13 = smov %s1295_s17  ;;  %14 = sbr.rel (!%p12_p10) target bundleno = 4 (0x4), region = 66 }
 0x13c   :  { %671 = vsyncpa [#allocation3], 1 }
 0x13d   :  { %673 = vsyncpa [#allocation3 + $0x1], 1 }

</bundles_post_ra>
